<compile_context>
chip_gen: v5e
topology: v5e:2x2
jax: 0.10.0
libtpu: 0.0.40
codegen_flags: <defaults>
</compile_context>

<pallas_src>
import jax
import jax.numpy as jnp
from jax.experimental import pallas as pl
from jax.experimental.pallas import tpu as pltpu

INTERMEDIATE_LENGTH = 24
N_UNITS = 50
N_LAYERS = 3
BATCH = 200          # small demo batch; exercises a 2-step parallel grid
PADDED_DIM = 128     # lane-aligned hidden / output dimension


def _round_up(x, m):
    return ((x + m - 1) // m) * m


def _make_kernel(n_rest):
    """Kernel for: relu(x @ W0 + b0) followed by n_rest * relu(h @ Wi + bi)."""

    def kernel(x_ref, w0_ref, w_ref, b_ref, o_ref):
        # x_ref : (TB, n_units)        raw (unpadded) activations
        # w0_ref: (n_units, P)         layer-0 weight, (in, out) layout
        # w_ref : (n_rest, P, P)       remaining hidden layers + fc2
        # b_ref : (n_rest + 1, 1, P)   f32 biases (zero-padded lanes)
        # o_ref : (TB, P)              lane-dense output tile
        cdt = w0_ref.dtype                                  # MXU input dtype (bf16 default)
        h = jnp.dot(x_ref[...].astype(cdt), w0_ref[...],
                    preferred_element_type=jnp.float32)
        h = jnp.maximum(h + b_ref[0], 0.0)                  # f32 bias-add / ReLU
        for i in range(n_rest):                             # unrolled at trace time
            h = jnp.dot(h.astype(cdt), w_ref[i],
                        preferred_element_type=jnp.float32)
            h = jnp.maximum(h + b_ref[i + 1], 0.0)
        o_ref[...] = h.astype(o_ref.dtype)                  # unmasked 128-lane store

    return kernel


def pack_params(hidden_weights, hidden_biases, fc2_weight, fc2_bias,
                param_dtype=jnp.bfloat16, padded_dim=PADDED_DIM):
    """Call ONCE at model-build time.

    Packs PyTorch-layout weights ((out, in)) into:
      w0     : (n_units, P)         layer-0 weight, pre-transposed to (in, out)
      w_slab : (n_layers, P, P)     layers 1..n-1 + fc2, pre-transposed, zero-padded
      b_slab : (n_layers + 1, 1, P) f32 biases, zero-padded
    Keeping layer 0 at its true input width lets the kernel consume x directly
    (no per-call 50 -> 128 lane-padding pass through HBM).
    """
    n_units = hidden_weights[0].shape[1]
    out_dim = fc2_weight.shape[0]
    P = padded_dim

    w0 = jnp.zeros((n_units, P), jnp.float32).at[:, :n_units].set(hidden_weights[0].T)

    ws, bs = [], []
    bs.append(jnp.zeros((1, P), jnp.float32).at[0, :n_units].set(hidden_biases[0]))
    for w, b in zip(hidden_weights[1:], hidden_biases[1:]):
        ws.append(jnp.zeros((P, P), jnp.float32).at[:n_units, :n_units].set(w.T))
        bs.append(jnp.zeros((1, P), jnp.float32).at[0, :n_units].set(b))
    ws.append(jnp.zeros((P, P), jnp.float32).at[:n_units, :out_dim].set(fc2_weight.T))
    bs.append(jnp.zeros((1, P), jnp.float32).at[0, :out_dim].set(fc2_bias))

    w_slab = jnp.stack(ws).astype(param_dtype)     # (n_layers, P, P)
    b_slab = jnp.stack(bs)                         # (n_layers+1, 1, P), keep f32
    return w0.astype(param_dtype), w_slab, b_slab, out_dim


def _choose_tile_b(batch, max_tile=1024):
    """Pick the batch tile.

    Big tiles amortize the ~0.35us per-grid-step overhead and the per-step MXU
    RHS pushes; keeping >= 2 grid steps (when the batch allows) lets both v7x
    TensorCores take work on the "parallel" axis.  On v5e/v6e (1 TC) the
    two-way split is still near-optimal because the tiles stay large.  A
    1024x128 f32 activation tile is only 512 KiB, so this fits every
    generation's VMEM (including v7x's 64 MiB) with room to spare.
    """
    if batch <= 128:
        return _round_up(batch, 8)                              # single tile
    return min(max_tile, _round_up(-(-batch // 2), 8))          # two-way split, capped


def forecasting_sub_block(x, w0, w_slab, b_slab, out_dim, *, tile_b=None):
    """x: (B, n_units).  Params from pack_params.  Returns (B, out_dim)."""
    B, n_units = x.shape
    n_rest, P, _ = w_slab.shape
    if tile_b is None:
        tile_b = _choose_tile_b(B)
    grid = (pl.cdiv(B, tile_b),)   # ragged batch tail handled by masked tile I/O

    # Scheduler hint only (counts lane-padded work; not a roofline number).
    flops = 2 * B * (n_units * P + n_rest * P * P)
    bytes_accessed = int(x.size * x.dtype.itemsize
                         + w0.size * w0.dtype.itemsize
                         + w_slab.size * w_slab.dtype.itemsize
                         + b_slab.size * b_slab.dtype.itemsize
                         + B * P * x.dtype.itemsize)

    out_padded = pl.pallas_call(
        _make_kernel(n_rest),
        out_shape=jax.ShapeDtypeStruct((B, P), x.dtype),
        grid_spec=pltpu.PrefetchScalarGridSpec(
            num_scalar_prefetch=0,
            grid=grid,
            in_specs=[
                pl.BlockSpec((tile_b, n_units), lambda i: (i, 0)),      # activations (no pad)
                pl.BlockSpec((n_units, P), lambda i: (0, 0)),           # layer-0 W (resident)
                pl.BlockSpec((n_rest, P, P), lambda i: (0, 0, 0)),      # W slab    (resident)
                pl.BlockSpec((n_rest + 1, 1, P), lambda i: (0, 0, 0)),  # biases    (resident)
            ],
            out_specs=pl.BlockSpec((tile_b, P), lambda i: (i, 0)),
        ),
        compiler_params=pltpu.CompilerParams(
            dimension_semantics=("parallel",)),
        cost_estimate=pl.CostEstimate(
            flops=flops, transcendentals=0, bytes_accessed=bytes_accessed),
    )(x, w0, w_slab, b_slab)

    # Kernel stores a lane-dense (…,128) slab; slice back to the true width here.
    return out_padded[:, :out_dim]


def _reference(x, hidden_weights, hidden_biases, fc2_weight, fc2_bias):
    h = x
    for w, bi in zip(hidden_weights, hidden_biases):
        h = jnp.maximum(h @ w.T + bi, 0.0)
    return jnp.maximum(h @ fc2_weight.T + fc2_bias, 0.0)


if __name__ == "__main__":
    key = jax.random.PRNGKey(0)
    keys = jax.random.split(key, 2 * N_LAYERS + 3)

    # Deterministic synthetic parameters (PyTorch Linear weight layout: (out, in)).
    hidden_weights, hidden_biases = [], []
    for i in range(N_LAYERS):
        hidden_weights.append(
            jax.random.normal(keys[2 * i], (N_UNITS, N_UNITS), jnp.float32) * 0.1)
        hidden_biases.append(
            jax.random.normal(keys[2 * i + 1], (N_UNITS,), jnp.float32) * 0.1)
    fc2_weight = jax.random.normal(
        keys[2 * N_LAYERS], (INTERMEDIATE_LENGTH, N_UNITS), jnp.float32) * 0.1
    fc2_bias = jax.random.normal(
        keys[2 * N_LAYERS + 1], (INTERMEDIATE_LENGTH,), jnp.float32) * 0.1

    x = jax.random.normal(keys[2 * N_LAYERS + 2], (BATCH, N_UNITS), jnp.float32)

    ref = _reference(x, hidden_weights, hidden_biases, fc2_weight, fc2_bias)

    # Default (production) path: bf16 MXU operands, f32 accumulate/bias/ReLU.
    w0, ws, bs, out_dim = pack_params(
        hidden_weights, hidden_biases, fc2_weight, fc2_bias)   # bf16 by default
    out = jax.block_until_ready(forecasting_sub_block(x, w0, ws, bs, out_dim))
    assert out.shape == (BATCH, INTERMEDIATE_LENGTH)
    assert bool(jnp.all(jnp.isfinite(out)))
    assert float(jnp.max(jnp.abs(out - ref))) < 5e-2

    # f32-parameter path (validation only; exact match to the reference).
    w0f, wsf, bsf, _ = pack_params(
        hidden_weights, hidden_biases, fc2_weight, fc2_bias, param_dtype=jnp.float32)
    out32 = jax.block_until_ready(forecasting_sub_block(x, w0f, wsf, bsf, out_dim))
    assert out32.shape == (BATCH, INTERMEDIATE_LENGTH)
    assert jnp.allclose(out32, ref, atol=1e-5, rtol=1e-5)

    print("KERNEL_OK")
</pallas_src>

<mosaic_0001>
module attributes {stable_mosaic.version = 11 : i64} {
  func.func @kernel(%arg0: i32, %arg1: memref<104x50xf32, #tpu.memory_space<vmem>>, %arg2: memref<50x128xbf16, #tpu.memory_space<vmem>>, %arg3: memref<3x128x128xbf16, #tpu.memory_space<vmem>>, %arg4: memref<4x1x128xf32, #tpu.memory_space<vmem>>, %arg5: memref<104x128xf32, #tpu.memory_space<vmem>>) attributes {dimension_semantics = [#tpu.dimension_semantics<parallel>], iteration_bounds = array<i64: 2>, scalar_prefetch = 0 : i64, scratch_operands = 0 : i64, tpu.core_type = #tpu.core_type<tc>, window_params = [{transform_indices = @transform_0, window_bounds = array<i64: 104, 50>}, {pipeline_mode = #tpu.pipeline_mode<synchronous>, transform_indices = @transform_1, window_bounds = array<i64: 50, 128>}, {pipeline_mode = #tpu.pipeline_mode<synchronous>, transform_indices = @transform_2, window_bounds = array<i64: 3, 128, 128>}, {pipeline_mode = #tpu.pipeline_mode<synchronous>, transform_indices = @transform_3, window_bounds = array<i64: 4, 1, 128>}, {transform_indices = @transform_4, window_bounds = array<i64: 104, 128>}]} {
    %c0 = arith.constant 0 : index
    %c0_0 = arith.constant 0 : index
    %0 = vector.load %arg1[%c0, %c0_0] : memref<104x50xf32, #tpu.memory_space<vmem>>, vector<104x50xf32>
    %1 = arith.truncf %0 : vector<104x50xf32> to vector<104x50xbf16>
    %c0_1 = arith.constant 0 : index
    %c0_2 = arith.constant 0 : index
    %2 = vector.load %arg2[%c0_1, %c0_2] : memref<50x128xbf16, #tpu.memory_space<vmem>>, vector<50x128xbf16>
    %cst = arith.constant dense<0.000000e+00> : vector<104x128xf32>
    %3 = tpu.matmul %1, %2, %cst {dimension_numbers = #tpu.dot_dimension_numbers<[1], [0], [0], [1], [0, 0, 1, 1], [], []>} : vector<104x50xbf16>, vector<50x128xbf16>, vector<104x128xf32> -> vector<104x128xf32>
    %c0_3 = arith.constant 0 : index
    %c0_4 = arith.constant 0 : index
    %c0_5 = arith.constant 0 : index
    %4 = vector.load %arg4[%c0_3, %c0_4, %c0_5] : memref<4x1x128xf32, #tpu.memory_space<vmem>>, vector<1x1x128xf32>
    %5 = vector.shape_cast %4 : vector<1x1x128xf32> to vector<1x128xf32>
    %6 = vector.broadcast %5 : vector<1x128xf32> to vector<104x128xf32>
    %7 = arith.addf %3, %6 : vector<104x128xf32>
    %cst_6 = arith.constant 0.000000e+00 : f32
    %8 = vector.broadcast %cst_6 : f32 to vector<104x128xf32>
    %9 = arith.maximumf %7, %8 : vector<104x128xf32>
    %10 = arith.truncf %9 : vector<104x128xf32> to vector<104x128xbf16>
    %c0_7 = arith.constant 0 : index
    %c0_8 = arith.constant 0 : index
    %c0_9 = arith.constant 0 : index
    %11 = vector.load %arg3[%c0_7, %c0_8, %c0_9] : memref<3x128x128xbf16, #tpu.memory_space<vmem>>, vector<1x128x128xbf16>
    %12 = vector.shape_cast %11 : vector<1x128x128xbf16> to vector<128x128xbf16>
    %cst_10 = arith.constant dense<0.000000e+00> : vector<104x128xf32>
    %13 = tpu.matmul %10, %12, %cst_10 {dimension_numbers = #tpu.dot_dimension_numbers<[1], [0], [0], [1], [0, 0, 1, 1], [], []>} : vector<104x128xbf16>, vector<128x128xbf16>, vector<104x128xf32> -> vector<104x128xf32>
    %c1 = arith.constant 1 : index
    %c0_11 = arith.constant 0 : index
    %c0_12 = arith.constant 0 : index
    %14 = vector.load %arg4[%c1, %c0_11, %c0_12] : memref<4x1x128xf32, #tpu.memory_space<vmem>>, vector<1x1x128xf32>
    %15 = vector.shape_cast %14 : vector<1x1x128xf32> to vector<1x128xf32>
    %16 = vector.broadcast %15 : vector<1x128xf32> to vector<104x128xf32>
    %17 = arith.addf %13, %16 : vector<104x128xf32>
    %cst_13 = arith.constant 0.000000e+00 : f32
    %18 = vector.broadcast %cst_13 : f32 to vector<104x128xf32>
    %19 = arith.maximumf %17, %18 : vector<104x128xf32>
    %20 = arith.truncf %19 : vector<104x128xf32> to vector<104x128xbf16>
    %c1_14 = arith.constant 1 : index
    %c0_15 = arith.constant 0 : index
    %c0_16 = arith.constant 0 : index
    %21 = vector.load %arg3[%c1_14, %c0_15, %c0_16] : memref<3x128x128xbf16, #tpu.memory_space<vmem>>, vector<1x128x128xbf16>
    %22 = vector.shape_cast %21 : vector<1x128x128xbf16> to vector<128x128xbf16>
    %cst_17 = arith.constant dense<0.000000e+00> : vector<104x128xf32>
    %23 = tpu.matmul %20, %22, %cst_17 {dimension_numbers = #tpu.dot_dimension_numbers<[1], [0], [0], [1], [0, 0, 1, 1], [], []>} : vector<104x128xbf16>, vector<128x128xbf16>, vector<104x128xf32> -> vector<104x128xf32>
    %c2 = arith.constant 2 : index
    %c0_18 = arith.constant 0 : index
    %c0_19 = arith.constant 0 : index
    %24 = vector.load %arg4[%c2, %c0_18, %c0_19] : memref<4x1x128xf32, #tpu.memory_space<vmem>>, vector<1x1x128xf32>
    %25 = vector.shape_cast %24 : vector<1x1x128xf32> to vector<1x128xf32>
    %26 = vector.broadcast %25 : vector<1x128xf32> to vector<104x128xf32>
    %27 = arith.addf %23, %26 : vector<104x128xf32>
    %cst_20 = arith.constant 0.000000e+00 : f32
    %28 = vector.broadcast %cst_20 : f32 to vector<104x128xf32>
    %29 = arith.maximumf %27, %28 : vector<104x128xf32>
    %30 = arith.truncf %29 : vector<104x128xf32> to vector<104x128xbf16>
    %c2_21 = arith.constant 2 : index
    %c0_22 = arith.constant 0 : index
    %c0_23 = arith.constant 0 : index
    %31 = vector.load %arg3[%c2_21, %c0_22, %c0_23] : memref<3x128x128xbf16, #tpu.memory_space<vmem>>, vector<1x128x128xbf16>
    %32 = vector.shape_cast %31 : vector<1x128x128xbf16> to vector<128x128xbf16>
    %cst_24 = arith.constant dense<0.000000e+00> : vector<104x128xf32>
    %33 = tpu.matmul %30, %32, %cst_24 {dimension_numbers = #tpu.dot_dimension_numbers<[1], [0], [0], [1], [0, 0, 1, 1], [], []>} : vector<104x128xbf16>, vector<128x128xbf16>, vector<104x128xf32> -> vector<104x128xf32>
    %c3 = arith.constant 3 : index
    %c0_25 = arith.constant 0 : index
    %c0_26 = arith.constant 0 : index
    %34 = vector.load %arg4[%c3, %c0_25, %c0_26] : memref<4x1x128xf32, #tpu.memory_space<vmem>>, vector<1x1x128xf32>
    %35 = vector.shape_cast %34 : vector<1x1x128xf32> to vector<1x128xf32>
    %36 = vector.broadcast %35 : vector<1x128xf32> to vector<104x128xf32>
    %37 = arith.addf %33, %36 : vector<104x128xf32>
    %cst_27 = arith.constant 0.000000e+00 : f32
    %38 = vector.broadcast %cst_27 : f32 to vector<104x128xf32>
    %39 = arith.maximumf %37, %38 : vector<104x128xf32>
    %c0_28 = arith.constant 0 : index
    %c0_29 = arith.constant 0 : index
    %40 = vector.load %arg5[%c0_28, %c0_29] : memref<104x128xf32, #tpu.memory_space<vmem>>, vector<104x128xf32>
    tpu.vector_store %arg5[%c0_28, %c0_29], %39 {strides = array<i32>} : memref<104x128xf32, #tpu.memory_space<vmem>>, vector<104x128xf32>,
    return
  }
  func.func @transform_0(%arg0: i32) -> (i32, i32) {
    %c0_i32 = arith.constant 0 : i32
    %c0_i32_0 = arith.constant 0 : i32
    return %arg0, %c0_i32 : i32, i32
  }
  func.func @transform_1(%arg0: i32) -> (i32, i32) {
    %c0_i32 = arith.constant 0 : i32
    %c0_i32_0 = arith.constant 0 : i32
    %c0_i32_1 = arith.constant 0 : i32
    return %c0_i32, %c0_i32_0 : i32, i32
  }
  func.func @transform_2(%arg0: i32) -> (i32, i32, i32) {
    %c0_i32 = arith.constant 0 : i32
    %c0_i32_0 = arith.constant 0 : i32
    %c0_i32_1 = arith.constant 0 : i32
    %c0_i32_2 = arith.constant 0 : i32
    return %c0_i32, %c0_i32_0, %c0_i32_1 : i32, i32, i32
  }
  func.func @transform_3(%arg0: i32) -> (i32, i32, i32) {
    %c0_i32 = arith.constant 0 : i32
    %c0_i32_0 = arith.constant 0 : i32
    %c0_i32_1 = arith.constant 0 : i32
    %c0_i32_2 = arith.constant 0 : i32
    return %c0_i32, %c0_i32_0, %c0_i32_1 : i32, i32, i32
  }
  func.func @transform_4(%arg0: i32) -> (i32, i32) {
    %c0_i32 = arith.constant 0 : i32
    %c0_i32_0 = arith.constant 0 : i32
    return %arg0, %c0_i32 : i32, i32
  }
}

</mosaic_0001>

<bundles_post_ra>
// kernel: tpu_custom_call.1
= control target key start
LH: loop header
LB: loop body
LE: loop exit
PB: predicated region body
PF: predicated region fallthrough
CT: control target
= control target key end

     0   :  { %9 = vsyncpa [#allocation3], 0  ;;  %s1447_s0 = inlined_call_operand.vmem [shape: f32[200,50], index: 0, kind: input, shape index: {}]   ;;  %s1448_s1 = inlined_call_operand.vmem [shape: bf16[50,128], index: 1, kind: input, shape index: {}]   ;;  %s1449_s2 = inlined_call_operand.vmem [shape: bf16[3,128,128], index: 2, kind: input, shape index: {}]   ;;  %s1450_s3 = inlined_call_operand.vmem [shape: f32[4,1,128], index: 3, kind: input, shape index: {}]   ;;  %s1451_s4 = inlined_call_operand.hbm [shape: f32[200,128], index: 4, kind: output, shape index: {}]  }
   0x1   :  { %11 = vsyncpa [#allocation3 + $0x1], 0  ;;  %s1192_s15 = smov 0   ;;  %s1194_s16 = smov 0  }
   0x2   :  { %s1196_s17 = smov 0   ;;  %s1198_s18 = smov 0  }
   0x3 LB: > { %s1213_s19 = sadd.s32 4294967295, %s1162_s18   ;;  %s854_s20 = sadd.s32 4294967294, %s1162_s18   ;;  %s1162_s18 = sphi %s1198_s18, %s1458_s18   ;;  %s1158_s17 = sphi %s1196_s17, %s1457_s17   ;;  %s1154_s16 = sphi %s1194_s16, %s1456_s16   ;;  %s1150_s15 = sphi %s1192_s15, %s1455_s15  }
   0x4   : > { %s1217_s21 = sadd.s32 1, %s1162_s18   ;;  %s113_s22 = sadd.s32 1, %s1158_s17 }
   0x5   : > { %s110_s23 = ssub.s32 %s1162_s18, %s1217_s21  ;;  %p123_p0 = scmp.ne.s32.totalorder %s1158_s17, %s1154_s16 }
   0x6   : > { %p111_p1 = scmp.eq.s32.totalorder %s110_s23, 0  ;;  %p124_p2 = scmp.eq.s32.totalorder %s1213_s19, 1 }
   0x7   : > { %p129_p3 = scmp.ne.s32.totalorder %s1154_s16, %s1150_s15  ;;  %p130_p4 = scmp.eq.s32.totalorder %s854_s20, 1 }
   0x8   : > { %s1228_s24 = scalar_select %p111_p1, %s1158_s17, %s113_s22  }
   0x9   : > { %p1230_p5 = por %p124_p2, %p123_p0  ;;  %p1234_p6 = por %p130_p4, %p129_p3 }
   0xa   : > { %p857_p7 = scmp.ge.s32.totalorder %s1162_s18, 1  ;;  %p174_p8 = scmp.lt.s32.totalorder %s1162_s18, 3 }
   0xc   : > { %p175_p9 = pnand %p857_p7, %p174_p8 }
   0xd   : > { %s1244_s29 = smul.u32 (!%p175_p9), 13, %s1213_s19  ;;  %s201_s5 = sand.u32 (!%p175_p9), 1, %s1154_s16  }
   0xe   : > { %178 = sbr.rel (%p175_p9) target bundleno = 733 (0x2dd), region = 36  ;;  %s1386_s10 = scalar_lea.sflag (!%p175_p9), [#allocation3], %s201_s5 }
   0xf   : > { %p209_p10 = scmp.lt.s32.totalorder (!%p175_p9), %s1244_s29, 24  ;;  %s1044_s8 = smul.u32 (!%p175_p9), 104, %s201_s5 }
  0x11   : > { %s1369_s9 = scalar_lea.vmem (!%p175_p9), [#allocation2], %s1044_s8 }
  0x13   : > { %v250_v0 = vld [vmem:[%s1448_s1 + $0x18] sm:$0x1]  ;;  %vm298_vm0 = vcmask 1040384   ;;  %s210_s30 = scalar_select %p209_p10, %s1244_s29, 24  ;;  %v1018_v4 = vld [vmem:[%s1448_s1 + $0x10] sm:$0xff]  ;;  %v1017_v5 = vld [vmem:[%s1448_s1 + $0x8] sm:$0xff] }
  0x14   : > { %v268_v1 = vunpack.c.l.b16 %v250_v0  ;;  %v1016_v6 = vld [vmem:[%s1448_s1] sm:$0xff]  ;;  %vm276_vm1 = vcmask 408576   ;;  %v1026_v19 = vld [vmem:[%s1449_s2 + $0x38] sm:$0xff]  ;;  %v1025_v23 = vld [vmem:[%s1449_s2 + $0x30] sm:$0xff]  ;;  %s778_s11 = ssub.s32 (%p1230_p5), 25, %s1244_s29 }
  0x15   : > { %s858_s7 = sshll.u32 %s210_s30, 3  ;;  %434 = vmatpush.bf16.msra.mxu1 %v1026_v19  ;;  %v1024_v24 = vld [vmem:[%s1449_s2 + $0x28] sm:$0xff]  ;;  %v1023_v25 = vld [vmem:[%s1449_s2 + $0x20] sm:$0xff]  ;;  %v1022_v30 = vld [vmem:[%s1449_s2 + $0x18] sm:$0xff]  ;;  %p779_p11 = scmp.lt.s32.totalorder (%p1230_p5), %s778_s11, 13 }
  0x16   : > { %v272_v2 = vpack.c.b16 %v268_v1, %v268_v1  ;;  %s1257_s12 = scalar_lea.vmem %s1447_s0, %s858_s7  ;;  %v1021_v32 = vld [vmem:[%s1449_s2 + $0x10] sm:$0xff]  ;;  %v1020_v33 = vld [vmem:[%s1449_s2 + $0x8] sm:$0xff]  ;;  %v1019_v34 = vld [vmem:[%s1449_s2] sm:$0xff] }
  0x17   : > { %v224_v7 = vld [vmem:[%s1257_s12] sm:$0xff]  ;;  %v225_v8 = vld [vmem:[%s1257_s12 + $0x8] sm:$0xff]  ;;  %v226_v10 = vld [vmem:[%s1257_s12 + $0x10] sm:$0xff] }
  0x18   : > { %v300_v3 = vsel %vm298_vm0, %v272_v2, 0  ;;  %v237_v9 = vpack.c.bf16 %v225_v8, %v224_v7  ;;  %v227_v11 = vld [vmem:[%s1257_s12 + $0x18] sm:$0xff]  ;;  %v228_v13 = vld [vmem:[%s1257_s12 + $0x20] sm:$0xff]  ;;  %v229_v14 = vld [vmem:[%s1257_s12 + $0x28] sm:$0xff] }
  0x19   : > { %306 = vmatpush.bf16.msra.mxu0 %v300_v3  ;;  %v238_v12 = vpack.c.bf16 %v227_v11, %v226_v10  ;;  %v239_v15 = vpack.c.bf16 %v229_v14, %v228_v13  ;;  %v230_v16 = vld [vmem:[%s1257_s12 + $0x30] sm:$0xff]  ;;  %v231_v17 = vld [vmem:[%s1257_s12 + $0x38] sm:$0xff]  ;;  %v232_v20 = vld [vmem:[%s1257_s12 + $0x40] sm:$0xff]  ;;  %435 = vmatpush.bf16.msra.mxu1 %v1025_v23 }
  0x1a   : > { %v240_v18 = vpack.c.bf16 %v231_v17, %v230_v16  ;;  %v233_v21 = vld [vmem:[%s1257_s12 + $0x48] sm:$0xff]  ;;  %v234_v26 = vld [vmem:[%s1257_s12 + $0x50] sm:$0xff]  ;;  %v235_v27 = vld [vmem:[%s1257_s12 + $0x58] sm:$0xff] }
  0x1b   : > { %v241_v22 = vpack.c.bf16 %v233_v21, %v232_v20  ;;  %v242_v28 = vpack.c.bf16 %v235_v27, %v234_v26  ;;  %v236_v29 = vld [vmem:[%s1257_s12 + $0x60] sm:$0xff]  ;;  %v1034_v7 = vld [vmem:[%s1449_s2 + $0x78] sm:$0xff]  ;;  %v1032_v10 = vld [vmem:[%s1449_s2 + $0x68] sm:$0xff] }
  0x1c   : > { %v243_v31 = vpack.c.bf16 %v236_v29, %v236_v29  ;;  %v1085_v36 = vld [vmem:[%s1450_s3] ss:$0 sm:$0xff]  ;;  %567 = vmatpush.bf16.msra.mxu2 %v1034_v7 }
  0x1d   : > { %307 = vmatpush.bf16.msra.mxu0 %v1018_v4  ;;  %436 = vmatpush.bf16.msra.mxu1 %v1024_v24  ;;  %v1031_v14 = vld [vmem:[%s1449_s2 + $0x60] sm:$0xff]  ;;  %v1029_v24 = vld [vmem:[%s1449_s2 + $0x50] sm:$0xff] }
  0x1e   : > { %v1027_v26 = vld [vmem:[%s1449_s2 + $0x40] sm:$0xff] }
  0x21   : > { %308 = vmatpush.bf16.msra.mxu0 %v1017_v5  ;;  %437 = vmatpush.bf16.msra.mxu1 %v1023_v25  ;;  %v1028_v25 = vld [vmem:[%s1449_s2 + $0x48] sm:$0xff] }
  0x25   : > { %309 = vmatpush.bf16.msra.mxu0 %v1016_v6  ;;  %438 = vmatpush.bf16.msra.mxu1 %v1022_v30 }
  0x28   : > { %871 = vmatmul.msk.bf16.vlgmr.msra.gmra.mxu0 %vm276_vm1, %v237_v9  ;;  %v1033_v9 = vld [vmem:[%s1449_s2 + $0x70] sm:$0xff] }
  0x29   : > { %439 = vmatpush.bf16.msra.mxu1 %v1021_v32  ;;  %568 = vmatpush.bf16.msra.mxu2 %v1033_v9 }
  0x2d   : > { %440 = vmatpush.bf16.msra.mxu1 %v1020_v33  ;;  %569 = vmatpush.bf16.msra.mxu2 %v1032_v10 }
  0x31   : > { %441 = vmatpush.bf16.msra.mxu1 %v1019_v34  ;;  %570 = vmatpush.bf16.msra.mxu2 %v1031_v14 }
  0x38   : > { %872 = vmatmul.msk.bf16.gmra.mxu0 %vm276_vm1, %v238_v12 }
  0x48   : > { %873 = vmatmul.msk.bf16.gmra.mxu0 %vm276_vm1, %v239_v15 }
  0x58   : > { %874 = vmatmul.msk.bf16.gmra.mxu0 %vm276_vm1, %v240_v18 }
  0x68   : > { %875 = vmatmul.msk.bf16.gmra.mxu0 %vm276_vm1, %v241_v22  ;;  %v1030_v22 = vld [vmem:[%s1449_s2 + $0x58] sm:$0xff] }
  0x69   : > { %571 = vmatpush.bf16.msra.mxu2 %v1030_v22 }
  0x6d   : > { %572 = vmatpush.bf16.msra.mxu2 %v1029_v24 }
  0x71   : > { %573 = vmatpush.bf16.msra.mxu2 %v1028_v25 }
  0x75   : > { %574 = vmatpush.bf16.msra.mxu2 %v1027_v26 }
  0x78   : > { %876 = vmatmul.msk.bf16.gmra.mxu0 %vm276_vm1, %v242_v28  ;;  %v1086_v28 = vld [vmem:[%s1450_s3 + $0x1] ss:$0 sm:$0xff] }
  0x88   : > { %877 = vmatmul.msk.bf16.gmra.mxu0 %vm276_vm1, %v243_v31 }
  0xa5   : > { %v311_v35 = vpop.f32.mrf.mxu0 }
  0xa6   : > { %v312_v37 = vadd.f32 %v1085_v36, %v311_v35 }
  0xa8   : > { %v345_v40 = vmax.f32 %v312_v37, 0.0 }
  0xad   : > { %v313_v38 = vpop.f32.mrf.mxu0 }
  0xae   : > { %v314_v39 = vadd.f32 %v1085_v36, %v313_v38 }
  0xb0   : > { %v346_v41 = vmax.f32 %v314_v39, 0.0 }
  0xb2   : > { %v358_v42 = vpack.c.bf16 %v346_v41, %v345_v40 }
  0xb4   : > { %442 = vmatmul.bf16.vlgmr.msra.gmra.mxu1 %v358_v42 }
  0xb5   : > { %v316_v43 = vpop.f32.mrf.mxu0 }
  0xb6   : > { %v317_v44 = vadd.f32 %v1085_v36, %v316_v43 }
  0xb8   : > { %v347_v47 = vmax.f32 %v317_v44, 0.0 }
  0xbd   : > { %v318_v45 = vpop.f32.mrf.mxu0 }
  0xbe   : > { %v319_v46 = vadd.f32 %v1085_v36, %v318_v45 }
  0xc0   : > { %v348_v48 = vmax.f32 %v319_v46, 0.0 }
  0xc2   : > { %v359_v49 = vpack.c.bf16 %v348_v48, %v347_v47 }
  0xc4   : > { %447 = vmatmul.bf16.gmra.mxu1 %v359_v49 }
  0xc5   : > { %v321_v50 = vpop.f32.mrf.mxu0 }
  0xc6   : > { %v322_v51 = vadd.f32 %v1085_v36, %v321_v50 }
  0xc8   : > { %v349_v54 = vmax.f32 %v322_v51, 0.0 }
  0xcd   : > { %v323_v52 = vpop.f32.mrf.mxu0 }
  0xce   : > { %v324_v53 = vadd.f32 %v1085_v36, %v323_v52 }
  0xd0   : > { %v350_v55 = vmax.f32 %v324_v53, 0.0 }
  0xd2   : > { %v360_v56 = vpack.c.bf16 %v350_v55, %v349_v54 }
  0xd4   : > { %452 = vmatmul.bf16.gmra.mxu1 %v360_v56 }
  0xd5   : > { %v326_v57 = vpop.f32.mrf.mxu0 }
  0xd6   : > { %v327_v58 = vadd.f32 %v1085_v36, %v326_v57 }
  0xd8   : > { %v351_v61 = vmax.f32 %v327_v58, 0.0 }
  0xdd   : > { %v328_v59 = vpop.f32.mrf.mxu0 }
  0xde   : > { %v329_v60 = vadd.f32 %v1085_v36, %v328_v59 }
  0xe0   : > { %v352_v62 = vmax.f32 %v329_v60, 0.0 }
  0xe2   : > { %v361_v63 = vpack.c.bf16 %v352_v62, %v351_v61 }
  0xe4   : > { %457 = vmatmul.bf16.gmra.mxu1 %v361_v63  ;;  %v1042_v63 = vld [vmem:[%s1449_s2 + $0xb8] sm:$0xff] }
  0xe5   : > { %v331_v0 = vpop.f32.mrf.mxu0  ;;  %700 = vmatpush.bf16.msra.mxu3 %v1042_v63 }
  0xe6   : > { %v332_v1 = vadd.f32 %v1085_v36, %v331_v0 }
  0xe8   : > { %v353_v4 = vmax.f32 %v332_v1, 0.0  ;;  %v1041_v1 = vld [vmem:[%s1449_s2 + $0xb0] sm:$0xff] }
  0xe9   : > { %701 = vmatpush.bf16.msra.mxu3 %v1041_v1 }
  0xed   : > { %v333_v2 = vpop.f32.mrf.mxu0 }
  0xee   : > { %v334_v3 = vadd.f32 %v1085_v36, %v333_v2  ;;  %v1040_v2 = vld [vmem:[%s1449_s2 + $0xa8] sm:$0xff] }
  0xef   : > { %702 = vmatpush.bf16.msra.mxu3 %v1040_v2 }
  0xf0   : > { %v354_v5 = vmax.f32 %v334_v3, 0.0 }
  0xf2   : > { %v362_v6 = vpack.c.bf16 %v354_v5, %v353_v4 }
  0xf4   : > { %462 = vmatmul.bf16.gmra.mxu1 %v362_v6  ;;  %v1039_v6 = vld [vmem:[%s1449_s2 + $0xa0] sm:$0xff] }
  0xf5   : > { %v336_v8 = vpop.f32.mrf.mxu0  ;;  %703 = vmatpush.bf16.msra.mxu3 %v1039_v6 }
  0xf6   : > { %v337_v11 = vadd.f32 %v1085_v36, %v336_v8 }
  0xf8   : > { %v355_v15 = vmax.f32 %v337_v11, 0.0 }
  0xfd   : > { %v338_v12 = vpop.f32.mrf.mxu0 }
  0xfe   : > { %v339_v13 = vadd.f32 %v1085_v36, %v338_v12 }
 0x100   : > { %v356_v16 = vmax.f32 %v339_v13, 0.0 }
 0x102   : > { %v363_v17 = vpack.c.bf16 %v356_v16, %v355_v15  ;;  %v1038_v15 = vld [vmem:[%s1449_s2 + $0x98] sm:$0xff]  ;;  %v1037_v16 = vld [vmem:[%s1449_s2 + $0x90] sm:$0xff] }
 0x103   : > { %704 = vmatpush.bf16.msra.mxu3 %v1038_v15 }
 0x104   : > { %467 = vmatmul.bf16.gmra.mxu1 %v363_v17  ;;  %v1036_v17 = vld [vmem:[%s1449_s2 + $0x88] sm:$0xff] }
 0x105   : > { %v341_v18 = vpop.f32.mrf.mxu0 }
 0x106   : > { %v342_v19 = vadd.f32 %v1085_v36, %v341_v18  ;;  %v1035_v18 = vld [vmem:[%s1449_s2 + $0x80] sm:$0xff] }
 0x107   : > { %705 = vmatpush.bf16.msra.mxu3 %v1037_v16 }
 0x108   : > { %v357_v20 = vmax.f32 %v342_v19, 0.0 }
 0x10a   : > { %v364_v23 = vpack.c.bf16 %v357_v20, %v357_v20  ;;  %v1087_v20 = vld [vmem:[%s1450_s3 + $0x2] ss:$0 sm:$0xff] }
 0x10b   : > { %706 = vmatpush.bf16.msra.mxu3 %v1036_v17 }
 0x10d   : > { %v343_v21 = vpop.f32.mrf.mxu0 }
 0x10f   : > { %707 = vmatpush.bf16.msra.mxu3 %v1035_v18 }
 0x114   : > { %472 = vmatmul.bf16.gmra.mxu1 %v364_v23 }
 0x131   : > { %v443_v27 = vpop.f32.mrf.mxu1 }
 0x132   : > { %v444_v29 = vadd.f32 %v1086_v28, %v443_v27 }
 0x134   : > { %v477_v32 = vmax.f32 %v444_v29, 0.0 }
 0x139   : > { %v445_v30 = vpop.f32.mrf.mxu1 }
 0x13a   : > { %v446_v31 = vadd.f32 %v1086_v28, %v445_v30 }
 0x13c   : > { %v478_v33 = vmax.f32 %v446_v31, 0.0 }
 0x13e   : > { %v490_v34 = vpack.c.bf16 %v478_v33, %v477_v32 }
 0x140   : > { %575 = vmatmul.bf16.vlgmr.msra.gmra.mxu2 %v490_v34 }
 0x141   : > { %v448_v35 = vpop.f32.mrf.mxu1 }
 0x142   : > { %v449_v36 = vadd.f32 %v1086_v28, %v448_v35 }
 0x144   : > { %v479_v39 = vmax.f32 %v449_v36, 0.0 }
 0x149   : > { %v450_v37 = vpop.f32.mrf.mxu1 }
 0x14a   : > { %v451_v38 = vadd.f32 %v1086_v28, %v450_v37 }
 0x14c   : > { %v480_v40 = vmax.f32 %v451_v38, 0.0 }
 0x14e   : > { %v491_v41 = vpack.c.bf16 %v480_v40, %v479_v39 }
 0x150   : > { %580 = vmatmul.bf16.gmra.mxu2 %v491_v41 }
 0x151   : > { %v453_v42 = vpop.f32.mrf.mxu1 }
 0x152   : > { %v454_v43 = vadd.f32 %v1086_v28, %v453_v42 }
 0x154   : > { %v481_v46 = vmax.f32 %v454_v43, 0.0 }
 0x159   : > { %v455_v44 = vpop.f32.mrf.mxu1 }
 0x15a   : > { %v456_v45 = vadd.f32 %v1086_v28, %v455_v44 }
 0x15c   : > { %v482_v47 = vmax.f32 %v456_v45, 0.0 }
 0x15e   : > { %v492_v48 = vpack.c.bf16 %v482_v47, %v481_v46 }
 0x160   : > { %585 = vmatmul.bf16.gmra.mxu2 %v492_v48 }
 0x161   : > { %v458_v49 = vpop.f32.mrf.mxu1 }
 0x162   : > { %v459_v50 = vadd.f32 %v1086_v28, %v458_v49 }
 0x164   : > { %v483_v53 = vmax.f32 %v459_v50, 0.0 }
 0x169   : > { %v460_v51 = vpop.f32.mrf.mxu1 }
 0x16a   : > { %v461_v52 = vadd.f32 %v1086_v28, %v460_v51 }
 0x16c   : > { %v484_v54 = vmax.f32 %v461_v52, 0.0 }
 0x16e   : > { %v493_v55 = vpack.c.bf16 %v484_v54, %v483_v53 }
 0x170   : > { %590 = vmatmul.bf16.gmra.mxu2 %v493_v55 }
 0x171   : > { %v463_v56 = vpop.f32.mrf.mxu1 }
 0x172   : > { %v464_v57 = vadd.f32 %v1086_v28, %v463_v56 }
 0x174   : > { %v485_v60 = vmax.f32 %v464_v57, 0.0 }
 0x179   : > { %v465_v58 = vpop.f32.mrf.mxu1 }
 0x17a   : > { %v466_v59 = vadd.f32 %v1086_v28, %v465_v58 }
 0x17c   : > { %v486_v61 = vmax.f32 %v466_v59, 0.0 }
 0x17e   : > { %v494_v62 = vpack.c.bf16 %v486_v61, %v485_v60 }
 0x180   : > { %595 = vmatmul.bf16.gmra.mxu2 %v494_v62 }
 0x181   : > { %v468_v0 = vpop.f32.mrf.mxu1 }
 0x182   : > { %v469_v3 = vadd.f32 %v1086_v28, %v468_v0 }
 0x184   : > { %v487_v7 = vmax.f32 %v469_v3, 0.0  ;;  %v1088_v3 = vld [vmem:[%s1450_s3 + $0x3] ss:$0 sm:$0xff] }
 0x189   : > { %v470_v4 = vpop.f32.mrf.mxu1 }
 0x18a   : > { %v471_v5 = vadd.f32 %v1086_v28, %v470_v4 }
 0x18c   : > { %v488_v8 = vmax.f32 %v471_v5, 0.0 }
 0x18e   : > { %v495_v9 = vpack.c.bf16 %v488_v8, %v487_v7 }
 0x190   : > { %600 = vmatmul.bf16.gmra.mxu2 %v495_v9 }
 0x191   : > { %v473_v10 = vpop.f32.mrf.mxu1 }
 0x192   : > { %v474_v11 = vadd.f32 %v1086_v28, %v473_v10 }
 0x194   : > { %v489_v12 = vmax.f32 %v474_v11, 0.0 }
 0x196   : > { %v496_v14 = vpack.c.bf16 %v489_v12, %v489_v12 }
 0x199   : > { %v475_v13 = vpop.f32.mrf.mxu1 }
 0x1a0   : > { %605 = vmatmul.bf16.gmra.mxu2 %v496_v14 }
 0x1c3   : > { %v576_v19 = vpop.f32.mrf.mxu2 }
 0x1c4   : > { %v577_v21 = vadd.f32 %v1087_v20, %v576_v19 }
 0x1c6   : > { %v610_v24 = vmax.f32 %v577_v21, 0.0 }
 0x1cb   : > { %v578_v22 = vpop.f32.mrf.mxu2 }
 0x1cc   : > { %v579_v23 = vadd.f32 %v1087_v20, %v578_v22 }
 0x1ce   : > { %v611_v25 = vmax.f32 %v579_v23, 0.0 }
 0x1d0   : > { %v623_v26 = vpack.c.bf16 %v611_v25, %v610_v24 }
 0x1d2   : > { %708 = vmatmul.bf16.vlgmr.msra.gmra.mxu3 %v623_v26 }
 0x1d3   : > { %v581_v27 = vpop.f32.mrf.mxu2 }
 0x1d4   : > { %v582_v28 = vadd.f32 %v1087_v20, %v581_v27 }
 0x1d6   : > { %v612_v31 = vmax.f32 %v582_v28, 0.0 }
 0x1db   : > { %v583_v29 = vpop.f32.mrf.mxu2 }
 0x1dc   : > { %v584_v30 = vadd.f32 %v1087_v20, %v583_v29 }
 0x1de   : > { %v613_v32 = vmax.f32 %v584_v30, 0.0 }
 0x1e0   : > { %v624_v33 = vpack.c.bf16 %v613_v32, %v612_v31 }
 0x1e2   : > { %713 = vmatmul.bf16.gmra.mxu3 %v624_v33 }
 0x1e3   : > { %v586_v34 = vpop.f32.mrf.mxu2 }
 0x1e4   : > { %v587_v35 = vadd.f32 %v1087_v20, %v586_v34 }
 0x1e6   : > { %v614_v38 = vmax.f32 %v587_v35, 0.0 }
 0x1eb   : > { %v588_v36 = vpop.f32.mrf.mxu2 }
 0x1ec   : > { %v589_v37 = vadd.f32 %v1087_v20, %v588_v36 }
 0x1ee   : > { %v615_v39 = vmax.f32 %v589_v37, 0.0 }
 0x1f0   : > { %v625_v40 = vpack.c.bf16 %v615_v39, %v614_v38 }
 0x1f2   : > { %718 = vmatmul.bf16.gmra.mxu3 %v625_v40 }
 0x1f3   : > { %v591_v41 = vpop.f32.mrf.mxu2 }
 0x1f4   : > { %v592_v42 = vadd.f32 %v1087_v20, %v591_v41 }
 0x1f6   : > { %v616_v45 = vmax.f32 %v592_v42, 0.0 }
 0x1fb   : > { %v593_v43 = vpop.f32.mrf.mxu2 }
 0x1fc   : > { %v594_v44 = vadd.f32 %v1087_v20, %v593_v43 }
 0x1fe   : > { %v617_v46 = vmax.f32 %v594_v44, 0.0 }
 0x200   : > { %v626_v47 = vpack.c.bf16 %v617_v46, %v616_v45 }
 0x202   : > { %723 = vmatmul.bf16.gmra.mxu3 %v626_v47 }
 0x203   : > { %v596_v48 = vpop.f32.mrf.mxu2 }
 0x204   : > { %v597_v49 = vadd.f32 %v1087_v20, %v596_v48 }
 0x206   : > { %v618_v52 = vmax.f32 %v597_v49, 0.0 }
 0x20b   : > { %v598_v50 = vpop.f32.mrf.mxu2 }
 0x20c   : > { %v599_v51 = vadd.f32 %v1087_v20, %v598_v50 }
 0x20e   : > { %v619_v53 = vmax.f32 %v599_v51, 0.0 }
 0x210   : > { %v627_v54 = vpack.c.bf16 %v619_v53, %v618_v52 }
 0x212   : > { %728 = vmatmul.bf16.gmra.mxu3 %v627_v54 }
 0x213   : > { %v601_v55 = vpop.f32.mrf.mxu2 }
 0x214   : > { %v602_v56 = vadd.f32 %v1087_v20, %v601_v55 }
 0x216   : > { %v620_v59 = vmax.f32 %v602_v56, 0.0 }
 0x21b   : > { %v603_v57 = vpop.f32.mrf.mxu2 }
 0x21c   : > { %v604_v58 = vadd.f32 %v1087_v20, %v603_v57 }
 0x21e   : > { %v621_v60 = vmax.f32 %v604_v58, 0.0 }
 0x220   : > { %v628_v61 = vpack.c.bf16 %v621_v60, %v620_v59 }
 0x222   : > { %733 = vmatmul.bf16.gmra.mxu3 %v628_v61 }
 0x223   : > { %v606_v62 = vpop.f32.mrf.mxu2 }
 0x224   : > { %v607_v63 = vadd.f32 %v1087_v20, %v606_v62 }
 0x226   : > { %v622_v0 = vmax.f32 %v607_v63, 0.0 }
 0x228   : > { %v629_v2 = vpack.c.bf16 %v622_v0, %v622_v0 }
 0x22b   : > { %v608_v1 = vpop.f32.mrf.mxu2 }
 0x232   : > { %738 = vmatmul.bf16.gmra.mxu3 %v629_v2 }
 0x255   : > { %v709_v4 = vpop.f32.mrf.mxu3 }
 0x256   : > { %v710_v5 = vadd.f32 %v1088_v3, %v709_v4 }
 0x258   : > { %v743_v6 = vmax.f32 %v710_v5, 0.0 }
 0x25a   : > { %756 = vst [vmem:[%s1369_s9] sm:$0xff] %v743_v6 }
 0x25d   : > { %v711_v7 = vpop.f32.mrf.mxu3 }
 0x25e   : > { %v712_v8 = vadd.f32 %v1088_v3, %v711_v7 }
 0x260   : > { %v744_v9 = vmax.f32 %v712_v8, 0.0 }
 0x262   : > { %757 = vst [vmem:[%s1369_s9 + $0x8] sm:$0xff] %v744_v9 }
 0x265   : > { %v714_v10 = vpop.f32.mrf.mxu3 }
 0x266   : > { %v715_v11 = vadd.f32 %v1088_v3, %v714_v10 }
 0x268   : > { %v745_v12 = vmax.f32 %v715_v11, 0.0 }
 0x26a   : > { %758 = vst [vmem:[%s1369_s9 + $0x10] sm:$0xff] %v745_v12 }
 0x26d   : > { %v716_v13 = vpop.f32.mrf.mxu3 }
 0x26e   : > { %v717_v14 = vadd.f32 %v1088_v3, %v716_v13 }
 0x270   : > { %v746_v15 = vmax.f32 %v717_v14, 0.0 }
 0x272   : > { %759 = vst [vmem:[%s1369_s9 + $0x18] sm:$0xff] %v746_v15 }
 0x275   : > { %v719_v16 = vpop.f32.mrf.mxu3 }
 0x276   : > { %v720_v17 = vadd.f32 %v1088_v3, %v719_v16 }
 0x278   : > { %v747_v18 = vmax.f32 %v720_v17, 0.0 }
 0x27a   : > { %760 = vst [vmem:[%s1369_s9 + $0x20] sm:$0xff] %v747_v18 }
 0x27d   : > { %v721_v19 = vpop.f32.mrf.mxu3 }
 0x27e   : > { %v722_v20 = vadd.f32 %v1088_v3, %v721_v19 }
 0x280   : > { %v748_v21 = vmax.f32 %v722_v20, 0.0 }
 0x282   : > { %761 = vst [vmem:[%s1369_s9 + $0x28] sm:$0xff] %v748_v21 }
 0x285   : > { %v724_v22 = vpop.f32.mrf.mxu3 }
 0x286   : > { %v725_v23 = vadd.f32 %v1088_v3, %v724_v22 }
 0x288   : > { %v749_v24 = vmax.f32 %v725_v23, 0.0 }
 0x28a   : > { %762 = vst [vmem:[%s1369_s9 + $0x30] sm:$0xff] %v749_v24 }
 0x28d   : > { %v726_v25 = vpop.f32.mrf.mxu3 }
 0x28e   : > { %v727_v26 = vadd.f32 %v1088_v3, %v726_v25 }
 0x290   : > { %v750_v27 = vmax.f32 %v727_v26, 0.0 }
 0x292   : > { %763 = vst [vmem:[%s1369_s9 + $0x38] sm:$0xff] %v750_v27 }
 0x295   : > { %v729_v28 = vpop.f32.mrf.mxu3 }
 0x296   : > { %v730_v29 = vadd.f32 %v1088_v3, %v729_v28 }
 0x298   : > { %v751_v30 = vmax.f32 %v730_v29, 0.0 }
 0x29a   : > { %764 = vst [vmem:[%s1369_s9 + $0x40] sm:$0xff] %v751_v30 }
 0x29d   : > { %v731_v31 = vpop.f32.mrf.mxu3 }
 0x29e   : > { %v732_v32 = vadd.f32 %v1088_v3, %v731_v31 }
 0x2a0   : > { %v752_v33 = vmax.f32 %v732_v32, 0.0 }
 0x2a2   : > { %765 = vst [vmem:[%s1369_s9 + $0x48] sm:$0xff] %v752_v33 }
 0x2a5   : > { %v734_v34 = vpop.f32.mrf.mxu3 }
 0x2a6   : > { %v735_v35 = vadd.f32 %v1088_v3, %v734_v34 }
 0x2a8   : > { %v753_v36 = vmax.f32 %v735_v35, 0.0 }
 0x2aa   : > { %766 = vst [vmem:[%s1369_s9 + $0x50] sm:$0xff] %v753_v36 }
 0x2ad   : > { %v736_v37 = vpop.f32.mrf.mxu3 }
 0x2ae   : > { %v737_v38 = vadd.f32 %v1088_v3, %v736_v37 }
 0x2b0   : > { %v754_v39 = vmax.f32 %v737_v38, 0.0 }
 0x2b2   : > { %767 = vst [vmem:[%s1369_s9 + $0x58] sm:$0xff] %v754_v39 }
 0x2b5   : > { %v739_v40 = vpop.f32.mrf.mxu3 }
 0x2b6   : > { %v740_v41 = vadd.f32 %v1088_v3, %v739_v40 }
 0x2b8   : > { %v755_v42 = vmax.f32 %v740_v41, 0.0 }
 0x2b9   : > { %776 = sbr.rel (!%p1230_p5) target bundleno = 733 (0x2dd), region = 40 }
 0x2ba   : > { %768 = vst [vmem:[%s1369_s9 + $0x60] sm:$0xff] %v755_v42 }
 0x2bd   : > { %v741_v43 = vpop.f32.mrf.mxu3 }
 0x2be   : > { %s1460_s11 = smov (!%p779_p11, %s778_s11), 13 }
 0x2bf   : > { %s1009_s13 = sshll.u32 %s1460_s11, 3 }
 0x2c0   : > { %s782_s14 = ssub.s32 104, %s1009_s13 }
 0x2c1   : > { %s783_s12 = sshll.u32 %s782_s14, 4 }
 0x2c2   : > { %784 = vsyncadd %s1386_s10, %s783_s12  ;;  %p1395_p12 = scmp.ne.s32.totalorder %s1009_s13, 0  ;;  %s1043_s25 = smul.u32 104, %s1213_s19 }
 0x2c3   : > { %s789_s22 = sshll.u32 %s1369_s9, 4  ;;  %s1013_s29 = sshll.u32 %s1460_s11, 7  ;;  %s1405_s22 = int_to_ptr.vmem [resolvable:$true] %s789_s22 }
 0x2c4   : > { %s787_s28 = scalar_lea.hbm %s1451_s4, %s1043_s25  ;;  %s1089_s5 = sshra.s32 %s1405_s22, 4  ;;  %s1090_s5 = int_to_ptr.vmem [resolvable:$true] %s1089_s5 }
 0x2c5   : > { %s791_s30 = sshll.u32 %s787_s28, 4  ;;  %s1091_s6 = sshrl.u32 %s1013_s29, 4  ;;  %s1407_s30 = int_to_ptr.hbm [resolvable:$true] %s791_s30 }
 0x2c6   : > { %s1096_s7 = scalar_lea.vmem %s1090_s5, %s1091_s6  ;;  %s1164_s19 = smov [#allocation2]  }
 0x2c7   : > { %p1097_p13 = scmp.ne.s32.totalorder %s1090_s5, %s1096_s7  ;;  %s1100_s8 = scalar_lea.vmem %s1164_s19, 208 }
 0x2c8   : > { %p1102_p2 = scmp.lt.s32.totalorder %s1100_s8, %s1096_s7 }
 0x2c9   : > { %p1098_p0 = pnand %p1097_p13, %p1395_p12 }
 0x2cb   : > { %p1099_p1 = pneg %p1098_p0 }
 0x2cd   : > { %p1104_p3 = pnand %p1102_p2, %p1099_p1 }
 0x2cf   : > { %1107 = shalt.err (!%p1104_p3)
}
 0x2d0   : > { %s1108_s9 = sshra.s32 %s1407_s30, 4  ;;  %s1119_s25 = scalar_lea.hbm %s1451_s4, 200  ;;  %s1109_s9 = int_to_ptr.hbm [resolvable:$true] %s1108_s9 }
 0x2d1   : > { %s1115_s13 = scalar_lea.hbm %s1109_s9, %s1091_s6  ;;  %p1120_p8 = scmp.lt.s32.totalorder %s1109_s9, %s1451_s4 }
 0x2d2   : > { %p1116_p4 = scmp.ne.s32.totalorder %s1109_s9, %s1115_s13  ;;  %p1121_p9 = scmp.lt.s32.totalorder %s1119_s25, %s1115_s13 }
 0x2d4   : > { %p1117_p5 = pnand %p1116_p4, %p1395_p12  ;;  %p1122_p10 = por %p1121_p9, %p1120_p8 }
 0x2d6   : > { %p1118_p7 = pneg %p1117_p5 }
 0x2d8   : > { %p1123_p11 = pnand %p1122_p10, %p1118_p7 }
 0x2da   : > { %1126 = shalt.err (!%p1123_p11)
}
 0x2db   : > { %s1165_s28 = smov 128   ;;  %s1166_s5 = smov 8  }
 0x2dc   : > { %797 = dma.vmem_to_hbm [thread:$0]  (%p1395_p12), %s1405_s22, %s1013_s29, %s1407_s30, %s1386_s10, %s1165_s28, %s1165_s28, %s1166_s5  }
 0x2dd PF: > { %p1050_p13 = scmp.ge.s32.totalorder %s1162_s18, 2  ;;  %s806_s6 = sand.u32 1, %s1150_s15  }
 0x2de   : > { %s807_s7 = scalar_lea.sflag [#allocation3], %s806_s6 }
 0x2df   : > { %p1047_p0 = pnand %p1050_p13, %p1234_p6 }
 0x2e1   : > { %p1048_p1 = pneg %p1047_p0 }
 0x2e3   : > { %1145 = dma.done.wait (%p1048_p1), %s807_s7, 1664  }
 0x2e4   : > { %1147 = vsyncadd (%p1048_p1), %s807_s7, 4294965632  ;;  %p14_p2 = scmp.ge.s32.totalorder %s1217_s21, 4   ;;  %s1455_s15 = smov %s1154_s16 }
 0x2e5   : > { %s1456_s16 = smov %s1158_s17  ;;  %s1457_s17 = smov %s1228_s24 }
 0x2e6   : > { %s1458_s18 = smov %s1217_s21  ;;  %16 = sbr.rel (!%p14_p2) target bundleno = 3 (0x3), region = 76 }
 0x2eb   :  { %813 = vsyncpa [#allocation3], 1 }
 0x2ec   :  { %815 = vsyncpa [#allocation3 + $0x1], 1 }

</bundles_post_ra>
